<compile_context>
chip_gen: v6e
topology: v6e:2x2x1
jax: 0.10.0
libtpu: 0.0.40
codegen_flags: <defaults>
</compile_context>

<pallas_src>
import functools

import jax
import jax.numpy as jnp
import numpy as np
from jax.experimental import pallas as pl
from jax.experimental.pallas import tpu as pltpu


# ---------------------------------------------------------------------------
# Pass 1: fused input projections -> (value bf16) , (pixel offsets | logits)
# ---------------------------------------------------------------------------
def _fused_proj_kernel(q_ref, base_ref, w_ref, b_ref, val_ref, offlog_ref,
                       *, C, HP):
    q = q_ref[0].astype(jnp.bfloat16)                         # (TQ, C)
    res = (jnp.dot(q, w_ref[...], preferred_element_type=jnp.float32)
           + b_ref[...])                                      # (TQ, C+3HP) f32

    # value projection columns -> slim bf16 slab consumed by pass 2
    val_ref[0] = res[:, 0:C].astype(jnp.bfloat16)

    # fold per-query pixel bases into the offset columns (pass 2 then reads
    # ready-to-use pixel coordinates: px = ref*W - 0.5 + off, no divides).
    base = base_ref[...]                                      # (TQ, 2) f32
    px = res[:, C:C + HP] + base[:, 0:1]
    py = res[:, C + HP:C + 2 * HP] + base[:, 1:2]
    logits = res[:, C + 2 * HP:C + 3 * HP]
    offlog_ref[0] = jnp.concatenate([px, py, logits], axis=-1)


# ---------------------------------------------------------------------------
# Pass 2: deformable sampling + fused (output_proj @ mlp_out) + residual
# ---------------------------------------------------------------------------
def _defn_attn_kernel(offlog_ref, value_ref, qres_ref, wtail_ref, btail_ref,
                      out_ref, *, C, n_heads, n_points, W_sp, agg_dtype):
    P = n_points
    HP = n_heads * P
    D = C // n_heads

    offlog = offlog_ref[0]                                    # (TQ, 3HP) f32
    value = value_ref[0]                                      # (Nv, C) bf16
    TQ = offlog.shape[0]
    Nv = value.shape[0]

    # value-grid pixel coordinates via in-kernel iota (no DMA'd vgrid input)
    col = jax.lax.broadcasted_iota(jnp.int32, (1, Nv), 1).astype(jnp.float32)
    vy = jnp.floor(col / W_sp)                                # (1, Nv)
    vx = col - vy * W_sp

    px_all = offlog[:, 0:HP].astype(agg_dtype)                # (TQ, HP)
    py_all = offlog[:, HP:2 * HP].astype(agg_dtype)
    logits = offlog[:, 2 * HP:3 * HP]                         # softmax in f32
    vx = vx.astype(agg_dtype)
    vy = vy.astype(agg_dtype)

    heads = []
    for h in range(n_heads):
        # softmax over this head's n_points sampling points (exact division;
        # the denominator is only (TQ, 1) so the cost is negligible).
        lg = logits[:, h * P:(h + 1) * P]
        lg = lg - jnp.max(lg, axis=-1, keepdims=True)
        e = jnp.exp(lg)
        attn = (e / jnp.sum(e, axis=-1, keepdims=True)).astype(agg_dtype)

        # dense aggregation matrix = bilinear tent weights * attention
        # weights; exactly grid_sample(bilinear, zeros, align_corners=False).
        agg = jnp.zeros((TQ, Nv), agg_dtype)
        for p in range(P):
            c0 = h * P + p
            tx = jnp.maximum(0.0, 1.0 - jnp.abs(px_all[:, c0:c0 + 1] - vx))
            ty = jnp.maximum(0.0, 1.0 - jnp.abs(py_all[:, c0:c0 + 1] - vy))
            agg = agg + attn[:, p:p + 1] * (tx * ty)

        # per-head sampled output stays in vregs (no VMEM scratch round trip)
        heads.append(jnp.dot(agg.astype(jnp.bfloat16),
                             value[:, h * D:(h + 1) * D],
                             preferred_element_type=jnp.float32))

    sampled = jnp.concatenate(heads, axis=-1)                 # (TQ, C) f32

    # fused output_proj @ mlp_out tail + residual (dropout = identity, eval)
    out_ref[0] = (jnp.dot(sampled.astype(jnp.bfloat16), wtail_ref[...],
                          preferred_element_type=jnp.float32)
                  + btail_ref[...] + qres_ref[0])


# ---------------------------------------------------------------------------
# host-side wrapper
# ---------------------------------------------------------------------------
def _pick_agg_dtype():
    """bf16 elementwise math only on generations with a bf16 VPU (v6e/v7x)."""
    try:
        kind = jax.devices()[0].device_kind.lower()
    except Exception:
        return jnp.float32
    if any(old in kind for old in ("v2", "v3", "v4", "v5")):
        return jnp.float32
    return jnp.bfloat16


def _pass2_vmem_bytes(N, C, HP, tq, agg_bytes):
    dbl = 2                                          # pipeline double buffers
    slab = dbl * N * C * 2                           # resident bf16 value slab
    tiles = dbl * (tq * 3 * HP * 4 + 2 * tq * C * 4) # offlog + residual + out
    weights = dbl * (C * C * 2 + C * 4)
    scratch = 8 * tq * N * agg_bytes                 # agg / tent temporaries
    return slab + tiles + weights + scratch


def init_ref_points(Z, X):
    z = jnp.linspace(0.5, Z - 0.5, Z)
    x = jnp.linspace(0.5, X - 0.5, X)
    ref_z, ref_x = jnp.meshgrid(z, x, indexing="ij")
    ref_z = ref_z.reshape(-1) / Z
    ref_x = ref_x.reshape(-1) / X
    return jnp.stack([ref_z, ref_x], axis=-1).astype(jnp.float32)   # (Z*X, 2)


def sa_defn_attn(query, ref_points, params, *, H_sp, W_sp, n_heads, n_points,
                 tq=128, agg_dtype=None):
    B, N, C = query.shape
    HP = n_heads * n_points
    N_in = H_sp * W_sp
    KP = C + 3 * HP                    # fused projection width (=128 here)
    assert N == N_in, "value grid must match query grid (value = query.clone())"
    assert N % tq == 0 and tq % 8 == 0 and C % n_heads == 0

    if agg_dtype is None:
        agg_dtype = _pick_agg_dtype()
    agg_bytes = jnp.dtype(agg_dtype).itemsize

    query = query.astype(jnp.float32)

    # ---- host-side operand packing ----
    # offset projection split into x (even) / y (odd) output columns; the
    # module feeds ref coord 0 through MSDeformAttn's x/W path (module quirk,
    # kept faithful to the PyTorch composition).
    wox = params["woff"][:, 0::2]
    woy = params["woff"][:, 1::2]
    box = params["boff"][0::2]
    boy = params["boff"][1::2]

    w_in = jnp.concatenate([params["wv"], wox, woy, params["wattn"]],
                           axis=1).astype(jnp.bfloat16)              # (C, KP)
    b_in = jnp.concatenate([params["bv"], box, boy, params["battn"]]
                           )[None, :].astype(jnp.float32)            # (1, KP)

    # output_proj and mlp_out fused into a single tail matmul (dropout is
    # identity, no nonlinearity in between).
    w_tail = (params["wout"] @ params["wmlp"]).astype(jnp.bfloat16)  # (C, C)
    b_tail = (params["bout"] @ params["wmlp"]
              + params["bmlp"])[None, :].astype(jnp.float32)         # (1, C)

    # per-query pixel bases: px = ref0*W - 0.5 + off_x ; py = ref1*H - 0.5 + off_y
    base = jnp.stack([ref_points[:, 0] * W_sp - 0.5,
                      ref_points[:, 1] * H_sp - 0.5],
                     axis=-1).astype(jnp.float32)                    # (N, 2)

    # ---- pass 1: fused projections -> bf16 value slab + pixel-offsets/logits
    p1 = functools.partial(_fused_proj_kernel, C=C, HP=HP)
    value_bf, offlog = pl.pallas_call(
        p1,
        out_shape=(jax.ShapeDtypeStruct((B, N, C), jnp.bfloat16),
                   jax.ShapeDtypeStruct((B, N, 3 * HP), jnp.float32)),
        grid=(B, N // tq),
        in_specs=[
            pl.BlockSpec((1, tq, C), lambda b, t: (b, t, 0)),
            pl.BlockSpec((tq, 2), lambda b, t: (t, 0)),
            pl.BlockSpec((C, KP), lambda b, t: (0, 0)),
            pl.BlockSpec((1, KP), lambda b, t: (0, 0)),
        ],
        out_specs=(pl.BlockSpec((1, tq, C), lambda b, t: (b, t, 0)),
                   pl.BlockSpec((1, tq, 3 * HP), lambda b, t: (b, t, 0))),
        compiler_params=pltpu.CompilerParams(
            dimension_semantics=("parallel", "parallel")),
    )(query, base, w_in, b_in)

    # ---- pass 2: deformable attention + fused tail + residual ----
    est = _pass2_vmem_bytes(N, C, HP, tq, agg_bytes)
    vmem_limit = None
    if est > 12 * 1024 * 1024:
        # never request the whole physical VMEM (64 MiB/core on v7x); leave
        # headroom for compiler scratch and pipeline buffers.
        vmem_limit = min(int(1.5 * est), 48 * 1024 * 1024)

    kernel = functools.partial(_defn_attn_kernel, C=C, n_heads=n_heads,
                               n_points=n_points, W_sp=W_sp,
                               agg_dtype=agg_dtype)
    out = pl.pallas_call(
        kernel,
        out_shape=jax.ShapeDtypeStruct((B, N, C), jnp.float32),
        grid=(B, N // tq),
        in_specs=[
            pl.BlockSpec((1, tq, 3 * HP), lambda b, t: (b, t, 0)),  # offsets|logits
            pl.BlockSpec((1, N, C), lambda b, t: (b, 0, 0)),        # bf16 value slab (resident per batch)
            pl.BlockSpec((1, tq, C), lambda b, t: (b, t, 0)),       # residual query
            pl.BlockSpec((C, C), lambda b, t: (0, 0)),              # fused tail weight
            pl.BlockSpec((1, C), lambda b, t: (0, 0)),              # fused tail bias
        ],
        out_specs=pl.BlockSpec((1, tq, C), lambda b, t: (b, t, 0)),
        compiler_params=pltpu.CompilerParams(
            dimension_semantics=("parallel", "parallel"),
            vmem_limit_bytes=vmem_limit),
    )(offlog, value_bf, query, w_tail, b_tail)
    return out


# ---------------------------------------------------------------------------
# pure-JAX reference of the PyTorch forward (for verification)
# ---------------------------------------------------------------------------
def reference(query, ref_points, params, *, H_sp, W_sp, n_heads, n_points):
    B, N, C = query.shape
    D = C // n_heads
    P = n_points
    value = query @ params["wv"] + params["bv"]
    off = (query @ params["woff"] + params["boff"]).reshape(B, N, n_heads, P, 2)
    attn = (query @ params["wattn"] + params["battn"]).reshape(B, N, n_heads, P)
    attn = jax.nn.softmax(attn, axis=-1)
    normalizer = jnp.array([W_sp, H_sp], jnp.float32)
    loc = ref_points[None, :, None, None, :] + off / normalizer
    px = loc[..., 0] * W_sp - 0.5
    py = loc[..., 1] * H_sp - 0.5
    x0 = jnp.floor(px)
    y0 = jnp.floor(py)
    fx = px - x0
    fy = py - y0
    value_h = value.reshape(B, N, n_heads, D)
    b_idx = jnp.arange(B)[:, None, None, None]
    h_idx = jnp.arange(n_heads)[None, None, :, None]
    sampled = jnp.zeros((B, N, n_heads, P, D), jnp.float32)
    for dy in (0, 1):
        for dx in (0, 1):
            xi = (x0 + dx).astype(jnp.int32)
            yi = (y0 + dy).astype(jnp.int32)
            w = (fx if dx else 1.0 - fx) * (fy if dy else 1.0 - fy)
            valid = (xi >= 0) & (xi < W_sp) & (yi >= 0) & (yi < H_sp)
            idx = jnp.clip(yi * W_sp + xi, 0, H_sp * W_sp - 1)
            g = value_h[b_idx, idx, h_idx, :]                  # (B,N,nH,P,D)
            sampled = sampled + jnp.where(valid, w, 0.0)[..., None] * g
    out = (sampled * attn[..., None]).sum(axis=3).reshape(B, N, C)
    out = out @ params["wout"] + params["bout"]
    return out @ params["wmlp"] + params["bmlp"] + query


if __name__ == "__main__":
    B = 2
    C = 32                    # in_c
    n_heads, n_points = 4, 8  # msdef_kwargs (n_levels = 1)
    Hq = Wq = 16              # small query_shape; value spatial grid matches it
    N = Hq * Wq               # 256 -> two 128-query tiles per batch

    key = jax.random.PRNGKey(0)
    ks = jax.random.split(key, 11)

    def nrm(k, shape, s):
        return jax.random.normal(k, shape, jnp.float32) * s

    params = {
        "wv": nrm(ks[0], (C, C), 0.1), "bv": nrm(ks[1], (C,), 0.01),
        "woff": nrm(ks[2], (C, n_heads * n_points * 2), 0.1),
        "boff": nrm(ks[3], (n_heads * n_points * 2,), 0.5),
        "wattn": nrm(ks[4], (C, n_heads * n_points), 0.1),
        "battn": nrm(ks[5], (n_heads * n_points,), 0.1),
        "wout": nrm(ks[6], (C, C), 0.1), "bout": nrm(ks[7], (C,), 0.01),
        "wmlp": nrm(ks[8], (C, C), 0.1), "bmlp": nrm(ks[9], (C,), 0.01),
    }

    query = jax.random.normal(ks[10], (B, N, C), jnp.float32)
    ref_points = init_ref_points(Hq, Wq)

    out = sa_defn_attn(query, ref_points, params,
                       H_sp=Hq, W_sp=Wq, n_heads=n_heads, n_points=n_points,
                       tq=128)
    out = jax.block_until_ready(out)

    ref = reference(query, ref_points, params,
                    H_sp=Hq, W_sp=Wq, n_heads=n_heads, n_points=n_points)

    assert out.shape == (B, N, C)
    np.testing.assert_allclose(np.asarray(out), np.asarray(ref),
                               rtol=2e-2, atol=2e-2)
    print("KERNEL_OK")
</pallas_src>

<mosaic_0001>
module attributes {stable_mosaic.version = 11 : i64} {
  func.func @_fused_proj_kernel(%arg0: i32, %arg1: i32, %arg2: memref<1x128x32xf32, #tpu.memory_space<vmem>>, %arg3: memref<128x2xf32, #tpu.memory_space<vmem>>, %arg4: memref<32x128xbf16, #tpu.memory_space<vmem>>, %arg5: memref<1x128xf32, #tpu.memory_space<vmem>>, %arg6: memref<1x128x32xbf16, #tpu.memory_space<vmem>>, %arg7: memref<1x128x96xf32, #tpu.memory_space<vmem>>) attributes {dimension_semantics = [#tpu.dimension_semantics<parallel>, #tpu.dimension_semantics<parallel>], iteration_bounds = array<i64: 2, 2>, scalar_prefetch = 0 : i64, scratch_operands = 0 : i64, tpu.core_type = #tpu.core_type<tc>, window_params = [{transform_indices = @transform_0, window_bounds = array<i64: 1, 128, 32>}, {transform_indices = @transform_1, window_bounds = array<i64: 128, 2>}, {pipeline_mode = #tpu.pipeline_mode<synchronous>, transform_indices = @transform_2, window_bounds = array<i64: 32, 128>}, {pipeline_mode = #tpu.pipeline_mode<synchronous>, transform_indices = @transform_3, window_bounds = array<i64: 1, 128>}, {transform_indices = @transform_4, window_bounds = array<i64: 1, 128, 32>}, {transform_indices = @transform_5, window_bounds = array<i64: 1, 128, 96>}]} {
    %c0 = arith.constant 0 : index
    %c0_0 = arith.constant 0 : index
    %c0_1 = arith.constant 0 : index
    %0 = vector.load %arg2[%c0, %c0_0, %c0_1] : memref<1x128x32xf32, #tpu.memory_space<vmem>>, vector<1x128x32xf32>
    %1 = vector.shape_cast %0 : vector<1x128x32xf32> to vector<128x32xf32>
    %2 = arith.truncf %1 : vector<128x32xf32> to vector<128x32xbf16>
    %c0_2 = arith.constant 0 : index
    %c0_3 = arith.constant 0 : index
    %3 = vector.load %arg4[%c0_2, %c0_3] : memref<32x128xbf16, #tpu.memory_space<vmem>>, vector<32x128xbf16>
    %cst = arith.constant dense<0.000000e+00> : vector<128x128xf32>
    %4 = tpu.matmul %2, %3, %cst {dimension_numbers = #tpu.dot_dimension_numbers<[1], [0], [0], [1], [0, 0, 1, 1], [], []>} : vector<128x32xbf16>, vector<32x128xbf16>, vector<128x128xf32> -> vector<128x128xf32>
    %c0_4 = arith.constant 0 : index
    %c0_5 = arith.constant 0 : index
    %5 = vector.load %arg5[%c0_4, %c0_5] : memref<1x128xf32, #tpu.memory_space<vmem>>, vector<1x128xf32>
    %6 = vector.broadcast %5 : vector<1x128xf32> to vector<128x128xf32>
    %7 = arith.addf %4, %6 : vector<128x128xf32>
    %8 = vector.extract_strided_slice %7 {offsets = [0, 0], sizes = [128, 32], strides = [1, 1]} : vector<128x128xf32> to vector<128x32xf32>
    %9 = arith.truncf %8 : vector<128x32xf32> to vector<128x32xbf16>
    %c0_6 = arith.constant 0 : index
    %c0_7 = arith.constant 0 : index
    %c0_8 = arith.constant 0 : index
    %10 = vector.load %arg6[%c0_6, %c0_7, %c0_8] : memref<1x128x32xbf16, #tpu.memory_space<vmem>>, vector<1x128x32xbf16>
    %11 = vector.shape_cast %10 : vector<1x128x32xbf16> to vector<128x32xbf16>
    %12 = vector.shape_cast %9 : vector<128x32xbf16> to vector<1x128x32xbf16>
    tpu.vector_store %arg6[%c0_6, %c0_7, %c0_8], %12 {strides = array<i32>} : memref<1x128x32xbf16, #tpu.memory_space<vmem>>, vector<1x128x32xbf16>,
    %c0_9 = arith.constant 0 : index
    %c0_10 = arith.constant 0 : index
    %13 = vector.load %arg3[%c0_9, %c0_10] : memref<128x2xf32, #tpu.memory_space<vmem>>, vector<128x2xf32>
    %14 = vector.extract_strided_slice %7 {offsets = [0, 32], sizes = [128, 32], strides = [1, 1]} : vector<128x128xf32> to vector<128x32xf32>
    %15 = vector.extract_strided_slice %13 {offsets = [0, 0], sizes = [128, 1], strides = [1, 1]} : vector<128x2xf32> to vector<128x1xf32>
    %16 = vector.broadcast %15 : vector<128x1xf32> to vector<128x32xf32>
    %17 = arith.addf %14, %16 : vector<128x32xf32>
    %18 = vector.extract_strided_slice %7 {offsets = [0, 64], sizes = [128, 32], strides = [1, 1]} : vector<128x128xf32> to vector<128x32xf32>
    %19 = vector.extract_strided_slice %13 {offsets = [0, 1], sizes = [128, 1], strides = [1, 1]} : vector<128x2xf32> to vector<128x1xf32>
    %20 = vector.broadcast %19 : vector<128x1xf32> to vector<128x32xf32>
    %21 = arith.addf %18, %20 : vector<128x32xf32>
    %22 = vector.extract_strided_slice %7 {offsets = [0, 96], sizes = [128, 32], strides = [1, 1]} : vector<128x128xf32> to vector<128x32xf32>
    %23 = tpu.concatenate %17, %21, %22 in 1 : vector<128x32xf32>, vector<128x32xf32>, vector<128x32xf32> -> vector<128x96xf32>
    %c0_11 = arith.constant 0 : index
    %c0_12 = arith.constant 0 : index
    %c0_13 = arith.constant 0 : index
    %24 = vector.load %arg7[%c0_11, %c0_12, %c0_13] : memref<1x128x96xf32, #tpu.memory_space<vmem>>, vector<1x128x96xf32>
    %25 = vector.shape_cast %24 : vector<1x128x96xf32> to vector<128x96xf32>
    %26 = vector.shape_cast %23 : vector<128x96xf32> to vector<1x128x96xf32>
    tpu.vector_store %arg7[%c0_11, %c0_12, %c0_13], %26 {strides = array<i32>} : memref<1x128x96xf32, #tpu.memory_space<vmem>>, vector<1x128x96xf32>,
    return
  }
  func.func @transform_0(%arg0: i32, %arg1: i32) -> (i32, i32, i32) {
    %c0_i32 = arith.constant 0 : i32
    %c0_i32_0 = arith.constant 0 : i32
    return %arg0, %arg1, %c0_i32 : i32, i32, i32
  }
  func.func @transform_1(%arg0: i32, %arg1: i32) -> (i32, i32) {
    %c0_i32 = arith.constant 0 : i32
    %c0_i32_0 = arith.constant 0 : i32
    return %arg1, %c0_i32 : i32, i32
  }
  func.func @transform_2(%arg0: i32, %arg1: i32) -> (i32, i32) {
    %c0_i32 = arith.constant 0 : i32
    %c0_i32_0 = arith.constant 0 : i32
    %c0_i32_1 = arith.constant 0 : i32
    return %c0_i32, %c0_i32_0 : i32, i32
  }
  func.func @transform_3(%arg0: i32, %arg1: i32) -> (i32, i32) {
    %c0_i32 = arith.constant 0 : i32
    %c0_i32_0 = arith.constant 0 : i32
    %c0_i32_1 = arith.constant 0 : i32
    return %c0_i32, %c0_i32_0 : i32, i32
  }
  func.func @transform_4(%arg0: i32, %arg1: i32) -> (i32, i32, i32) {
    %c0_i32 = arith.constant 0 : i32
    %c0_i32_0 = arith.constant 0 : i32
    return %arg0, %arg1, %c0_i32 : i32, i32, i32
  }
  func.func @transform_5(%arg0: i32, %arg1: i32) -> (i32, i32, i32) {
    %c0_i32 = arith.constant 0 : i32
    %c0_i32_0 = arith.constant 0 : i32
    return %arg0, %arg1, %c0_i32 : i32, i32, i32
  }
}

</mosaic_0001>

<bundles_post_ra>
// kernel: tpu_custom_call.1
= control target key start
LH: loop header
LB: loop body
LE: loop exit
PB: predicated region body
PF: predicated region fallthrough
CT: control target
= control target key end

     0   :  { %s1364_s18 = smov 0   ;;  %s1366_s19 = smov 0   ;;  %s1841_s0 = inlined_call_operand.vmem [shape: f32[2,256,32], index: 0, kind: input, shape index: {}]   ;;  %s1842_s1 = inlined_call_operand.vmem [shape: f32[256,2], index: 1, kind: input, shape index: {}]   ;;  %s1843_s2 = inlined_call_operand.vmem [shape: bf16[32,128], index: 2, kind: input, shape index: {}]   ;;  %s1844_s3 = inlined_call_operand.vmem [shape: f32[1,128], index: 3, kind: input, shape index: {}]   ;;  %s1845_s4 = inlined_call_operand.vmem [shape: bf16[2,256,32], index: 4, kind: output, shape index: {0}]   ;;  %s1846_s5 = inlined_call_operand.vmem [shape: f32[2,256,96], index: 5, kind: output, shape index: {1}]  }
   0x1   :  { %s1368_s20 = smov 0   ;;  %s1370_s21 = smov 0  }
   0x2   :  { %s1372_s22 = smov 0  }
   0x3 LB: > { %s25_s23 = sadd.s32 1, %s1321_s20  ;;  %s28_s24 = sadd.s32 1, %s1325_s21  ;;  %s1329_s22 = sphi %s1372_s22, %s16_s22   ;;  %s1325_s21 = sphi %s1370_s21, %s1850_s21   ;;  %s1321_s20 = sphi %s1368_s20, %s1849_s20   ;;  %s1317_s19 = sphi %s1366_s19, %s1848_s19   ;;  %s1313_s18 = sphi %s1364_s18, %s1847_s18  }
   0x4   : > { %p26_p0 = scmp.ge.s32.totalorder %s25_s23, 2  ;;  %p1151_p1 = scmp.ge.s32.totalorder %s1329_s22, 1 }
   0x5   : > { %p224_p2 = scmp.lt.s32.totalorder %s1329_s22, 5 }
   0x6   : > { %s1852_s23 = smov (%p26_p0, %s25_s23), 0  ;;  %s1854_s24 = smov (!%p26_p0, %s28_s24), %s1325_s21 }
   0x7   : > { %p225_p3 = pnand %p1151_p1, %p224_p2  ;;  %p30_p4 = scmp.ge.s32.totalorder %s1854_s24, 2 }
   0x8   : > { %s1152_s27 = sshll.u32 (!%p225_p3), %s1313_s18, 4  ;;  %p275_p5 = scmp.lt.s32.totalorder (!%p225_p3), %s1317_s19, 1 }
   0x9   : > { %s1856_s24 = smov (%p30_p4, %s1854_s24), 0  ;;  %228 = sbr.rel (%p225_p3) target bundleno = 431 (0x1af), region = 36 }
   0xa   : > { %p277_p6 = scmp.lt.s32.totalorder (!%p225_p3), %s1152_s27, 31  ;;  %s1333_s26 = smov (!%p225_p3), 96  }
   0xe   : > { %v1289_v0 = vld [vmem:[%s1843_s2 + $0x8] sm:$0xff]   ;;  %v1290_v1 = vld [vmem:[%s1843_s2] sm:$0xff]   ;;  %s1858_s19 = smov (!%p275_p5, %s1317_s19), 1  ;;  %s1860_s27 = smov (!%p277_p6, %s1152_s27), 31  ;;  %v1331_v2 = vmov 0   ;;  %vm358_vm0 = vcmask 261120  }
   0xf   : > { %1218 = vmatprep.subr.bf16.mxu0 %v1289_v0  ;;  %1238 = vmatprep.subr.bf16.mxu1 %v1289_v0  ;;  %s1153_s30 = sshll.u32 %s1858_s19, 5  ;;  %s1156_s11 = sshll.u32 %s1860_s27, 3  ;;  %v1332_v43 = vmov 1   ;;  %v1494_v63 = vld [vmem:[%s1844_s3] ss:$0 sm:$0xff]  ;;  %vm544_vm1 = vcmask 257024  }
  0x10   : > { %1219 = vmatpush3.bf16.msra.mxu0 %v1289_v0  ;;  %1240 = vmatpush3.bf16.msra.mxu1 %v1289_v0  ;;  %s1400_s6 = sadd.s32 %s1153_s30, %s1860_s27  ;;  %s1422_s14 = scalar_lea.vmem %s1842_s1, %s1156_s11  ;;  %vm961_vm2 = vcmask 523264   ;;  %vm978_vm3 = vcmask 785408  }
  0x11   : > { %1220 = vmatprep.subr.bf16.mxu0 %v1290_v1  ;;  %1239 = vmatprep.subr.bf16.mxu1 %v1290_v1  ;;  %s1154_s7 = sshll.u32 %s1400_s6, 3  ;;  %v563_v23 = vld [vmem:[%s1422_s14 + $0x10] sm:$0xff]  ;;  %v561_v24 = vld [vmem:[%s1422_s14] sm:$0xff]  ;;  %v564_v28 = vld [vmem:[%s1422_s14 + $0x18] sm:$0xff]  ;;  %s1159_s17 = sshll.u32 %s1400_s6, 2 }
  0x12   : > { %1286 = vset.pattern.permute.xlu1 %v1331_v2  ;;  %1285 = vset.pattern.permute.xlu0 %v1331_v2  ;;  %s1408_s10 = scalar_lea.vmem %s1841_s0, %s1154_s7  ;;  %v562_v29 = vld [vmem:[%s1422_s14 + $0x8] sm:$0xff]  ;;  %v565_v32 = vld [vmem:[%s1422_s14 + $0x20] sm:$0xff]  ;;  %v568_v33 = vld [vmem:[%s1422_s14 + $0x38] sm:$0xff]  ;;  %s1505_s25 = scalar_lea.vmem %s1845_s4, %s1159_s17 }
  0x13   : > { %v311_v3 = vld [vmem:[%s1408_s10] sm:$0xff]  ;;  %v312_v4 = vld [vmem:[%s1408_s10 + $0x8] sm:$0xff]  ;;  %v313_v8 = vld [vmem:[%s1408_s10 + $0x10] sm:$0xff]  ;;  %589 = vperm.xlu1 %1286, %v563_v23   ;;  %579 = vperm.xlu0 %1285, %v561_v24   ;;  %s1760_s29 = scalar_lea.vmem %s1846_s5, %s1154_s7 }
  0x14   : > { %1221 = vmatpush3.bf16.msra.mxu0 %v1290_v1  ;;  %1241 = vmatpush3.bf16.msra.mxu1 %v1290_v1  ;;  %v319_v5 = vld [vmem:[%s1408_s10 + $0x40] sm:$0xff]  ;;  %v327_v6 = vpack.c.bf16 %v312_v4, %v311_v3  ;;  %v320_v7 = vld [vmem:[%s1408_s10 + $0x48] sm:$0xff]  ;;  %v314_v9 = vld [vmem:[%s1408_s10 + $0x18] sm:$0xff] }
  0x15   : > { %v331_v10 = vpack.c.bf16 %v320_v7, %v319_v5  ;;  %v328_v11 = vpack.c.bf16 %v314_v9, %v313_v8  ;;  %v321_v12 = vld [vmem:[%s1408_s10 + $0x50] sm:$0xff]  ;;  %v322_v13 = vld [vmem:[%s1408_s10 + $0x58] sm:$0xff]  ;;  %v315_v14 = vld [vmem:[%s1408_s10 + $0x20] sm:$0xff] }
  0x16   : > { %1222 = vmatprep.mubr.msk.bf16.mxu0 %vm358_vm0, %v327_v6  ;;  %v332_v15 = vpack.c.bf16 %v322_v13, %v321_v12  ;;  %v316_v16 = vld [vmem:[%s1408_s10 + $0x28] sm:$0xff]  ;;  %v323_v17 = vld [vmem:[%s1408_s10 + $0x60] sm:$0xff]  ;;  %v317_v21 = vld [vmem:[%s1408_s10 + $0x30] sm:$0xff] }
  0x17   : > { %v324_v18 = vld [vmem:[%s1408_s10 + $0x68] sm:$0xff]  ;;  %1230 = vmatprep.mubr.msk.bf16.mxu1 %vm358_vm0, %v331_v10  ;;  %1223 = vmatmul.mubr.msk.bf16.vlgmr.msra.gmra.mxu0 %vm358_vm0, %v328_v11  ;;  %v329_v19 = vpack.c.bf16 %v316_v16, %v315_v14  ;;  %v318_v22 = vld [vmem:[%s1408_s10 + $0x38] sm:$0xff]  ;;  %v325_v25 = vld [vmem:[%s1408_s10 + $0x70] sm:$0xff] }
  0x18   : > { %v333_v20 = vpack.c.bf16 %v324_v18, %v323_v17  ;;  %1231 = vmatmul.mubr.msk.bf16.vlgmr.msra.gmra.mxu1 %vm358_vm0, %v332_v15  ;;  %v326_v26 = vld [vmem:[%s1408_s10 + $0x78] sm:$0xff]  ;;  %v330_v27 = vpack.c.bf16 %v318_v22, %v317_v21  ;;  %594 = vperm.xlu1 %1286, %v564_v28   ;;  %v566_v31 = vld [vmem:[%s1422_s14 + $0x28] sm:$0xff]  ;;  %v567_v34 = vld [vmem:[%s1422_s14 + $0x30] sm:$0xff] }
  0x19   : > { %1226 = vmatprep.mubr.msk.bf16.mxu0 %vm358_vm0, %v329_v19  ;;  %v334_v30 = vpack.c.bf16 %v326_v26, %v325_v25  ;;  %584 = vperm.xlu0 %1285, %v562_v29   ;;  %v570_v35 = vld [vmem:[%s1422_s14 + $0x48] sm:$0xff]  ;;  %v569_v36 = vld [vmem:[%s1422_s14 + $0x40] sm:$0xff]  ;;  %v572_v37 = vld [vmem:[%s1422_s14 + $0x58] sm:$0xff] }
  0x1a   : > { %1234 = vmatprep.mubr.msk.bf16.mxu1 %vm358_vm0, %v333_v20  ;;  %v571_v38 = vld [vmem:[%s1422_s14 + $0x50] sm:$0xff]  ;;  %v574_v39 = vld [vmem:[%s1422_s14 + $0x68] sm:$0xff]  ;;  %v573_v40 = vld [vmem:[%s1422_s14 + $0x60] sm:$0xff] }
  0x1b   : > { %v576_v41 = vld [vmem:[%s1422_s14 + $0x78] sm:$0xff]  ;;  %v575_v42 = vld [vmem:[%s1422_s14 + $0x70] sm:$0xff] }
  0x1c   : > { %604 = vperm.xlu1 %1286, %v566_v31  }
  0x1d   : > { %599 = vperm.xlu0 %1285, %v565_v32  }
  0x1f   : > { %1227 = vmatmul.mubr.msk.bf16.gmra.mxu0 %vm358_vm0, %v330_v27 }
  0x20   : > { %1235 = vmatmul.mubr.msk.bf16.gmra.mxu1 %vm358_vm0, %v334_v30  ;;  %614 = vperm.xlu1 %1286, %v568_v33  }
  0x21   : > { %609 = vperm.xlu0 %1285, %v567_v34  }
  0x24   : > { %624 = vperm.xlu1 %1286, %v570_v35  }
  0x25   : > { %619 = vperm.xlu0 %1285, %v569_v36  }
  0x28   : > { %634 = vperm.xlu1 %1286, %v572_v37  }
  0x29   : > { %629 = vperm.xlu0 %1285, %v571_v38  }
  0x2c   : > { %644 = vperm.xlu1 %1286, %v574_v39  }
  0x2d   : > { %639 = vperm.xlu0 %1285, %v573_v40  }
  0x30   : > { %654 = vperm.xlu1 %1286, %v576_v41  }
  0x31   : > { %649 = vperm.xlu0 %1285, %v575_v42  }
  0x34   : > { %1288 = vset.pattern.permute.xlu1 %v1332_v43 }
  0x35   : > { %1287 = vset.pattern.permute.xlu0 %v1332_v43  ;;  %678 = vperm.xlu1 %1288, %v562_v29  }
  0x36   : > { %674 = vperm.xlu0 %1287, %v561_v24  }
  0x39   : > { %682 = vperm.xlu1 %1288, %v563_v23  }
  0x3a   : > { %686 = vperm.xlu0 %1287, %v564_v28  }
  0x3d   : > { %690 = vperm.xlu1 %1288, %v565_v32  }
  0x3e   : > { %694 = vperm.xlu0 %1287, %v566_v31  }
  0x41   : > { %698 = vperm.xlu1 %1288, %v567_v34  }
  0x42   : > { %702 = vperm.xlu0 %1287, %v568_v33  }
  0x45   : > { %706 = vperm.xlu1 %1288, %v569_v36  }
  0x46   : > { %710 = vperm.xlu0 %1287, %v570_v35  }
  0x49   : > { %714 = vperm.xlu1 %1288, %v571_v38  }
  0x4a   : > { %718 = vperm.xlu0 %1287, %v572_v37  }
  0x4d   : > { %722 = vperm.xlu1 %1288, %v573_v40  }
  0x4e   : > { %726 = vperm.xlu0 %1287, %v574_v39  }
  0x51   : > { %730 = vperm.xlu1 %1288, %v575_v42  }
  0x52   : > { %734 = vperm.xlu0 %1287, %v576_v41  }
  0x8e   : > { %v590_v44 = vpop.permute.xlu1 %589  ;;  %v1455_v45 = vpop.permute.xlu0 %579 }
  0x93   : > { %v1457_v46 = vpop.permute.xlu1 %594 }
  0x94   : > { %v1459_v47 = vpop.permute.xlu0 %584 }
  0x97   : > { %v1461_v48 = vpop.permute.xlu1 %604 }
  0x98   : > { %v1463_v49 = vpop.permute.xlu0 %599 }
  0x9b   : > { %v1465_v50 = vpop.permute.xlu1 %614 }
  0x9c   : > { %v1467_v51 = vpop.permute.xlu0 %609 }
  0x9f   : > { %v1469_v52 = vpop.permute.xlu1 %624 }
  0xa0   : > { %v1471_v53 = vpop.permute.xlu0 %619 }
  0xa3   : > { %v1473_v54 = vpop.permute.xlu1 %634 }
  0xa4   : > { %v1475_v55 = vpop.permute.xlu0 %629 }
  0xa7   : > { %v1477_v56 = vpop.permute.xlu1 %644 }
  0xa8   : > { %v1479_v57 = vpop.permute.xlu0 %639 }
  0xab   : > { %v1481_v58 = vpop.permute.xlu1 %654 }
  0xac   : > { %v1483_v59 = vpop.permute.xlu0 %649 }
  0xb0   : > { %v1485_v60 = vpop.permute.xlu1 %678 }
  0xb1   : > { %v1487_v61 = vpop.permute.xlu0 %674 }
  0xb4   : > { %v1489_v62 = vpop.permute.xlu1 %682 }
  0xb5   : > { %v1497_v0 = vpop.permute.xlu0 %686 }
  0xb8   : > { %v1507_v4 = vpop.permute.xlu1 %690 }
  0xb9   : > { %v1531_v16 = vpop.permute.xlu0 %694 }
  0xbc   : > { %v1551_v23 = vpop.permute.xlu1 %698 }
  0xbd   : > { %v1585_v37 = vpop.permute.xlu0 %702 }
  0xd7   : > { %v1224_v1 = vpop.f32.mrf.mxu0 }
  0xd8   : > { %v1500_v2 = vadd.f32 %v1224_v1, %v1494_v63  ;;  %v1232_v3 = vpop.f32.mrf.mxu1 }
  0xd9   : > { %v1510_v5 = vadd.f32 %v1232_v3, %v1494_v63  ;;  %v417_v6 = vpop.f32.mrf.mxu0  ;;  %v707_v3 = vpop.permute.xlu1 %706 }
  0xda   : > { %v1194_v7 = vpack.c.bf16 %v1500_v2, %v1500_v2  ;;  %v1515_v8 = vadd.f32 %v1494_v63, %v417_v6  ;;  %v449_v9 = vpop.f32.mrf.mxu1  ;;  %901 = vrot.lane.b32.xlu1 %v1500_v2, %s1333_s26  ;;  %v659_v30 = vadd.f32 %v590_v44, %v1500_v2 }
  0xdb   : > { %v1202_v10 = vpack.c.bf16 %v1510_v5, %v1510_v5  ;;  %v1522_v11 = vadd.f32 %v1494_v63, %v449_v9  ;;  %v1225_v12 = vpop.f32.mrf.mxu0  ;;  %v667_v44 = vadd.f32 %v1475_v55, %v1510_v5 }
  0xdc   : > { %547 = vst.msk [vmem:[%s1505_s25 + $0x8] sm:$0xf] %vm544_vm1, %v1194_v7  ;;  %v1192_v13 = vpack.c.bf16 %v1515_v8, %v1515_v8  ;;  %v1529_v14 = vadd.f32 %v1225_v12, %v1494_v63  ;;  %v1233_v15 = vpop.f32.mrf.mxu1 }
  0xdd   : > { %555 = vst.msk [vmem:[%s1505_s25 + $0x28] sm:$0xf] %vm544_vm1, %v1202_v10  ;;  %v1200_v17 = vpack.c.bf16 %v1522_v11, %v1522_v11  ;;  %v1538_v18 = vadd.f32 %v1233_v15, %v1494_v63  ;;  %v420_v19 = vpop.f32.mrf.mxu0 }
  0xde   : > { %545 = vst.msk [vmem:[%s1505_s25] sm:$0xf] %vm544_vm1, %v1192_v13  ;;  %v1195_v20 = vpack.c.bf16 %v1529_v14, %v1529_v14  ;;  %v1545_v21 = vadd.f32 %v1494_v63, %v420_v19  ;;  %v452_v22 = vpop.f32.mrf.mxu1  ;;  %917 = vrot.lane.b32.xlu1 %v1510_v5, %s1333_s26  ;;  %903 = vrot.lane.b32.xlu0 %v1529_v14, %s1333_s26 }
  0xdf   : > { %553 = vst.msk [vmem:[%s1505_s25 + $0x20] sm:$0xf] %vm544_vm1, %v1200_v17  ;;  %v1203_v24 = vpack.c.bf16 %v1538_v18, %v1538_v18  ;;  %v1558_v25 = vadd.f32 %v1494_v63, %v452_v22  ;;  %v1228_v26 = vpop.f32.mrf.mxu0  ;;  %v660_v1 = vadd.f32 %v1457_v46, %v1529_v14  ;;  %v739_v17 = vadd.f32 %v1489_v62, %v1500_v2  ;;  %v711_v22 = vpop.permute.xlu0 %710 }
  0xe0   : > { %548 = vst.msk [vmem:[%s1505_s25 + $0xc] sm:$0xf] %vm544_vm1, %v1195_v20  ;;  %v1193_v27 = vpack.c.bf16 %v1545_v21, %v1545_v21  ;;  %v1565_v28 = vadd.f32 %v1228_v26, %v1494_v63  ;;  %v1236_v29 = vpop.f32.mrf.mxu1  ;;  %v668_v19 = vadd.f32 %v1473_v54, %v1538_v18  ;;  %v715_v54 = vpop.permute.xlu1 %714  ;;  %v745_v26 = vadd.f32 %v707_v3, %v1522_v11 }
  0xe1   : > { %556 = vst.msk [vmem:[%s1505_s25 + $0x2c] sm:$0xf] %vm544_vm1, %v1203_v24  ;;  %v1201_v31 = vpack.c.bf16 %v1558_v25, %v1558_v25  ;;  %v1573_v32 = vadd.f32 %v1236_v29, %v1494_v63  ;;  %v433_v33 = vpop.f32.mrf.mxu0  ;;  %v747_v2 = vadd.f32 %v715_v54, %v1510_v5  ;;  %v658_v5 = vadd.f32 %v1459_v47, %v1545_v21 }
  0xe2   : > { %546 = vst.msk [vmem:[%s1505_s25 + $0x4] sm:$0xf] %vm544_vm1, %v1193_v27  ;;  %v1198_v34 = vpack.c.bf16 %v1565_v28, %v1565_v28  ;;  %v1580_v35 = vadd.f32 %v1494_v63, %v433_v33  ;;  %v465_v36 = vpop.f32.mrf.mxu1  ;;  %773 = vrot.lane.b32.xlu1 %v659_v30, %s1333_s26  ;;  %919 = vrot.lane.b32.xlu0 %v1538_v18, %s1333_s26 }
  0xe3   : > { %554 = vst.msk [vmem:[%s1505_s25 + $0x24] sm:$0xf] %vm544_vm1, %v1201_v31  ;;  %v1206_v38 = vpack.c.bf16 %v1573_v32, %v1573_v32  ;;  %v1592_v39 = vadd.f32 %v1494_v63, %v465_v36  ;;  %v1229_v40 = vpop.f32.mrf.mxu0  ;;  %v738_v47 = vadd.f32 %v1485_v60, %v1545_v21 }
  0xe4   : > { %551 = vst.msk [vmem:[%s1505_s25 + $0x18] sm:$0xf] %vm544_vm1, %v1198_v34  ;;  %v1196_v41 = vpack.c.bf16 %v1580_v35, %v1580_v35  ;;  %v1599_v42 = vadd.f32 %v1229_v40, %v1494_v63  ;;  %v1237_v43 = vpop.f32.mrf.mxu1  ;;  %v1642_v20 = vadd.f32 %v1507_v4, %v1580_v35  ;;  %v740_v4 = vadd.f32 %v1497_v0, %v1529_v14 }
  0xe5   : > { %559 = vst.msk [vmem:[%s1505_s25 + $0x38] sm:$0xf] %vm544_vm1, %v1206_v38  ;;  %v1204_v6 = vpack.c.bf16 %v1592_v39, %v1592_v39  ;;  %v1610_v7 = vadd.f32 %v1237_v43, %v1494_v63  ;;  %v436_v9 = vpop.f32.mrf.mxu0  ;;  %v1614_v10 = vadd.f32 %v1479_v57, %v1592_v39  ;;  %v657_v0 = vadd.f32 %v1455_v45, %v1515_v8 }
  0xe6   : > { %549 = vst.msk [vmem:[%s1505_s25 + $0x10] sm:$0xf] %vm544_vm1, %v1196_v41  ;;  %v1199_v46 = vpack.c.bf16 %v1599_v42, %v1599_v42  ;;  %v1621_v55 = vadd.f32 %v1494_v63, %v436_v9  ;;  %v468_v12 = vpop.f32.mrf.mxu1  ;;  %789 = vrot.lane.b32.xlu1 %v667_v44, %s1333_s26  ;;  %775 = vrot.lane.b32.xlu0 %v660_v1, %s1333_s26 }
  0xe7   : > { %557 = vst.msk [vmem:[%s1505_s25 + $0x30] sm:$0xf] %vm544_vm1, %v1204_v6  ;;  %v1207_v57 = vpack.c.bf16 %v1610_v7, %v1610_v7  ;;  %v1630_v13 = vadd.f32 %v1494_v63, %v468_v12  ;;  %v665_v14 = vadd.f32 %v1471_v53, %v1522_v11  ;;  %v737_v45 = vadd.f32 %v1487_v61, %v1515_v8 }
  0xe8   : > { %552 = vst.msk [vmem:[%s1505_s25 + $0x1c] sm:$0xf] %vm544_vm1, %v1199_v46  ;;  %v1197_v15 = vpack.c.bf16 %v1621_v55, %v1621_v55  ;;  %v1654_v62 = vadd.f32 %v1531_v16, %v1621_v55  ;;  %v746_v53 = vadd.f32 %v711_v22, %v1558_v25  ;;  %v664_v60 = vadd.f32 %v1465_v50, %v1599_v42 }
  0xe9   : > { %560 = vst.msk [vmem:[%s1505_s25 + $0x3c] sm:$0xf] %vm544_vm1, %v1207_v57  ;;  %v1205_v63 = vpack.c.bf16 %v1630_v13, %v1630_v13  ;;  %v1650_v24 = vadd.f32 %v1477_v56, %v1630_v13  ;;  %v719_v56 = vpop.permute.xlu0 %718  ;;  %v671_v61 = vadd.f32 %v1483_v59, %v1573_v32  ;;  %v744_v59 = vadd.f32 %v1585_v37, %v1599_v42 }
  0xea   : > { %550 = vst.msk [vmem:[%s1505_s25 + $0x14] sm:$0xf] %vm544_vm1, %v1197_v15  ;;  %837 = vrot.lane.b32.xlu1 %v739_v17, %s1333_s26  ;;  %791 = vrot.lane.b32.xlu0 %v668_v19, %s1333_s26  ;;  %v748_v16 = vadd.f32 %v719_v56, %v1538_v18  ;;  %v666_v18 = vadd.f32 %v1469_v52, %v1558_v25 }
  0xeb   : > { %558 = vst.msk [vmem:[%s1505_s25 + $0x34] sm:$0xf] %vm544_vm1, %v1205_v63  ;;  %v663_v52 = vadd.f32 %v1467_v51, %v1565_v28  ;;  %v743_v51 = vadd.f32 %v1551_v23, %v1565_v28  ;;  %v661_v23 = vadd.f32 %v1463_v49, %v1580_v35 }
  0xee   : > { %853 = vrot.lane.b32.xlu1 %v747_v2, %s1333_s26  ;;  %839 = vrot.lane.b32.xlu0 %v740_v4, %s1333_s26 }
  0xf2   : > { %855 = vrot.lane.b32.xlu0 %v748_v16, %s1333_s26  ;;  %897 = vrot.lane.b32.xlu1 %v1515_v8, %s1333_s26  ;;  %v723_v8 = vpop.permute.xlu1 %722 }
  0xf3   : > { %v749_v49 = vadd.f32 %v723_v8, %v1592_v39 }
  0xf6   : > { %899 = vrot.lane.b32.xlu0 %v1545_v21, %s1333_s26  ;;  %913 = vrot.lane.b32.xlu1 %v1522_v11, %s1333_s26  ;;  %v672_v11 = vadd.f32 %v1481_v58, %v1610_v7  ;;  %v727_v21 = vpop.permute.xlu0 %726  ;;  %v731_v50 = vpop.permute.xlu1 %730 }
  0xfa   : > { %915 = vrot.lane.b32.xlu0 %v1558_v25, %s1333_s26  ;;  %769 = vrot.lane.b32.xlu1 %v657_v0, %s1333_s26  ;;  %v751_v25 = vadd.f32 %v731_v50, %v1573_v32  ;;  %v735_v27 = vpop.permute.xlu0 %734 }
  0xfb   : > { %v752_v58 = vadd.f32 %v735_v27, %v1610_v7 }
  0xfe   : > { %771 = vrot.lane.b32.xlu0 %v658_v5, %s1333_s26  ;;  %785 = vrot.lane.b32.xlu1 %v665_v14, %s1333_s26 }
 0x102   : > { %787 = vrot.lane.b32.xlu0 %v666_v18, %s1333_s26  ;;  %833 = vrot.lane.b32.xlu1 %v737_v45, %s1333_s26 }
 0x106   : > { %835 = vrot.lane.b32.xlu0 %v738_v47, %s1333_s26  ;;  %849 = vrot.lane.b32.xlu1 %v745_v26, %s1333_s26 }
 0x10a   : > { %851 = vrot.lane.b32.xlu0 %v746_v53, %s1333_s26  ;;  %909 = vrot.lane.b32.xlu1 %v1565_v28, %s1333_s26  ;;  %v662_v28 = vadd.f32 %v1461_v48, %v1621_v55  ;;  %v750_v48 = vadd.f32 %v727_v21, %v1630_v13 }
 0x10e   : > { %911 = vrot.lane.b32.xlu0 %v1599_v42, %s1333_s26  ;;  %781 = vrot.lane.b32.xlu1 %v663_v52, %s1333_s26 }
 0x112   : > { %783 = vrot.lane.b32.xlu0 %v664_v60, %s1333_s26  ;;  %797 = vrot.lane.b32.xlu1 %v671_v61, %s1333_s26 }
 0x116   : > { %799 = vrot.lane.b32.xlu0 %v672_v11, %s1333_s26  ;;  %845 = vrot.lane.b32.xlu1 %v743_v51, %s1333_s26 }
 0x11a   : > { %847 = vrot.lane.b32.xlu0 %v744_v59, %s1333_s26  ;;  %861 = vrot.lane.b32.xlu1 %v751_v25, %s1333_s26 }
 0x11e   : > { %863 = vrot.lane.b32.xlu0 %v752_v58, %s1333_s26  ;;  %905 = vrot.lane.b32.xlu1 %v1580_v35, %s1333_s26 }
 0x122   : > { %907 = vrot.lane.b32.xlu0 %v1621_v55, %s1333_s26  ;;  %921 = vrot.lane.b32.xlu1 %v1592_v39, %s1333_s26 }
 0x126   : > { %923 = vrot.lane.b32.xlu0 %v1630_v13, %s1333_s26  ;;  %777 = vrot.lane.b32.xlu1 %v661_v23, %s1333_s26 }
 0x12a   : > { %779 = vrot.lane.b32.xlu0 %v662_v28, %s1333_s26  ;;  %793 = vrot.lane.b32.xlu1 %v1614_v10, %s1333_s26 }
 0x12e   : > { %795 = vrot.lane.b32.xlu0 %v1650_v24, %s1333_s26  ;;  %841 = vrot.lane.b32.xlu1 %v1642_v20, %s1333_s26 }
 0x132   : > { %843 = vrot.lane.b32.xlu0 %v1654_v62, %s1333_s26  ;;  %857 = vrot.lane.b32.xlu1 %v749_v49, %s1333_s26 }
 0x136   : > { %859 = vrot.lane.b32.xlu0 %v750_v48, %s1333_s26  ;;  %925 = vrot.lane.b32.xlu1 %v1573_v32, %s1333_s26 }
 0x13a   : > { %927 = vrot.lane.b32.xlu0 %v1610_v7, %s1333_s26 }
 0x14c   : > { %v902_v29 = vpop.permute.xlu1 %901 }
 0x150   : > { %v918_v30 = vpop.permute.xlu1 %917  ;;  %v904_v31 = vpop.permute.xlu0 %903 }
 0x154   : > { %v774_v33 = vpop.permute.xlu1 %773  ;;  %v920_v34 = vpop.permute.xlu0 %919 }
 0x158   : > { %v790_v35 = vpop.permute.xlu1 %789  ;;  %v776_v36 = vpop.permute.xlu0 %775 }
 0x15c   : > { %v838_v32 = vpop.permute.xlu1 %837  ;;  %v792_v37 = vpop.permute.xlu0 %791 }
 0x15d   : > { %v947_v38 = vsel %vm358_vm0, %v774_v33, %v838_v32 }
 0x15e   : > { %v964_v39 = vsel %vm961_vm2, %v947_v38, %v902_v29 }
 0x15f   : > { %981 = vst.msk [vmem:[%s1760_s29 + $0x10] sm:$0xff] %vm978_vm3, %v964_v39 }
 0x160   : > { %v854_v40 = vpop.permute.xlu1 %853  ;;  %v840_v41 = vpop.permute.xlu0 %839 }
 0x161   : > { %v955_v42 = vsel %vm358_vm0, %v790_v35, %v854_v40  ;;  %v948_v43 = vsel %vm358_vm0, %v776_v36, %v840_v41 }
 0x162   : > { %v972_v44 = vsel %vm961_vm2, %v955_v42, %v918_v30  ;;  %v965_v1 = vsel %vm961_vm2, %v948_v43, %v904_v31 }
 0x163   : > { %989 = vst.msk [vmem:[%s1760_s29 + $0x50] sm:$0xff] %vm978_vm3, %v972_v44  ;;  %982 = vst.msk [vmem:[%s1760_s29 + $0x18] sm:$0xff] %vm978_vm3, %v965_v1 }
 0x164   : > { %v856_v3 = vpop.permute.xlu0 %855  ;;  %v898_v6 = vpop.permute.xlu1 %897 }
 0x165   : > { %v956_v7 = vsel %vm358_vm0, %v792_v37, %v856_v3 }
 0x166   : > { %v973_v9 = vsel %vm961_vm2, %v956_v7, %v920_v34 }
 0x167   : > { %990 = vst.msk [vmem:[%s1760_s29 + $0x58] sm:$0xff] %vm978_vm3, %v973_v9 }
 0x168   : > { %v900_v10 = vpop.permute.xlu0 %899  ;;  %v914_v46 = vpop.permute.xlu1 %913 }
 0x16c   : > { %v916_v55 = vpop.permute.xlu0 %915  ;;  %v770_v12 = vpop.permute.xlu1 %769 }
 0x170   : > { %v772_v57 = vpop.permute.xlu0 %771  ;;  %v786_v13 = vpop.permute.xlu1 %785 }
 0x174   : > { %v788_v15 = vpop.permute.xlu0 %787  ;;  %v834_v17 = vpop.permute.xlu1 %833 }
 0x175   : > { %v945_v19 = vsel %vm358_vm0, %v770_v12, %v834_v17 }
 0x176   : > { %v962_v20 = vsel %vm961_vm2, %v945_v19, %v898_v6 }
 0x177   : > { %979 = vst.msk [vmem:[%s1760_s29] sm:$0xff] %vm978_vm3, %v962_v20 }
 0x178   : > { %v836_v22 = vpop.permute.xlu0 %835  ;;  %v850_v63 = vpop.permute.xlu1 %849 }
 0x179   : > { %v946_v24 = vsel %vm358_vm0, %v772_v57, %v836_v22  ;;  %v953_v62 = vsel %vm358_vm0, %v786_v13, %v850_v63 }
 0x17a   : > { %v963_v54 = vsel %vm961_vm2, %v946_v24, %v900_v10  ;;  %v970_v2 = vsel %vm961_vm2, %v953_v62, %v914_v46 }
 0x17b   : > { %980 = vst.msk [vmem:[%s1760_s29 + $0x8] sm:$0xff] %vm978_vm3, %v963_v54  ;;  %987 = vst.msk [vmem:[%s1760_s29 + $0x40] sm:$0xff] %vm978_vm3, %v970_v2 }
 0x17c   : > { %v852_v4 = vpop.permute.xlu0 %851  ;;  %v910_v56 = vpop.permute.xlu1 %909 }
 0x17d   : > { %v954_v16 = vsel %vm358_vm0, %v788_v15, %v852_v4 }
 0x17e   : > { %v971_v0 = vsel %vm961_vm2, %v954_v16, %v916_v55 }
 0x17f   : > { %988 = vst.msk [vmem:[%s1760_s29 + $0x48] sm:$0xff] %vm978_vm3, %v971_v0 }
 0x180   : > { %v912_v5 = vpop.permute.xlu0 %911  ;;  %v782_v14 = vpop.permute.xlu1 %781 }
 0x184   : > { %v784_v18 = vpop.permute.xlu0 %783  ;;  %v798_v45 = vpop.permute.xlu1 %797 }
 0x188   : > { %v800_v47 = vpop.permute.xlu0 %799  ;;  %v846_v26 = vpop.permute.xlu1 %845 }
 0x189   : > { %v951_v53 = vsel %vm358_vm0, %v782_v14, %v846_v26 }
 0x18a   : > { %v968_v52 = vsel %vm961_vm2, %v951_v53, %v910_v56 }
 0x18b   : > { %985 = vst.msk [vmem:[%s1760_s29 + $0x30] sm:$0xff] %vm978_vm3, %v968_v52 }
 0x18c   : > { %v848_v60 = vpop.permute.xlu0 %847  ;;  %v862_v61 = vpop.permute.xlu1 %861 }
 0x18d   : > { %v952_v8 = vsel %vm358_vm0, %v784_v18, %v848_v60  ;;  %v959_v32 = vsel %vm358_vm0, %v798_v45, %v862_v61 }
 0x18e   : > { %v969_v11 = vsel %vm961_vm2, %v952_v8, %v912_v5 }
 0x18f   : > { %986 = vst.msk [vmem:[%s1760_s29 + $0x38] sm:$0xff] %vm978_vm3, %v969_v11 }
 0x190   : > { %v864_v51 = vpop.permute.xlu0 %863  ;;  %v906_v21 = vpop.permute.xlu1 %905 }
 0x191   : > { %v960_v42 = vsel %vm358_vm0, %v800_v47, %v864_v51 }
 0x194   : > { %v908_v50 = vpop.permute.xlu0 %907  ;;  %v922_v59 = vpop.permute.xlu1 %921 }
 0x198   : > { %v924_v25 = vpop.permute.xlu0 %923  ;;  %v778_v27 = vpop.permute.xlu1 %777 }
 0x19c   : > { %v780_v58 = vpop.permute.xlu0 %779  ;;  %v794_v23 = vpop.permute.xlu1 %793 }
 0x1a0   : > { %v796_v28 = vpop.permute.xlu0 %795  ;;  %v842_v49 = vpop.permute.xlu1 %841 }
 0x1a1   : > { %v949_v48 = vsel %vm358_vm0, %v778_v27, %v842_v49 }
 0x1a2   : > { %v966_v29 = vsel %vm961_vm2, %v949_v48, %v906_v21 }
 0x1a3   : > { %983 = vst.msk [vmem:[%s1760_s29 + $0x20] sm:$0xff] %vm978_vm3, %v966_v29 }
 0x1a4   : > { %v844_v30 = vpop.permute.xlu0 %843  ;;  %v858_v31 = vpop.permute.xlu1 %857 }
 0x1a5   : > { %v950_v33 = vsel %vm358_vm0, %v780_v58, %v844_v30  ;;  %v957_v34 = vsel %vm358_vm0, %v794_v23, %v858_v31 }
 0x1a6   : > { %v967_v35 = vsel %vm961_vm2, %v950_v33, %v908_v50  ;;  %v974_v36 = vsel %vm961_vm2, %v957_v34, %v922_v59 }
 0x1a7   : > { %984 = vst.msk [vmem:[%s1760_s29 + $0x28] sm:$0xff] %vm978_vm3, %v967_v35  ;;  %991 = vst.msk [vmem:[%s1760_s29 + $0x60] sm:$0xff] %vm978_vm3, %v974_v36 }
 0x1a8   : > { %v860_v37 = vpop.permute.xlu0 %859  ;;  %v926_v38 = vpop.permute.xlu1 %925 }
 0x1a9   : > { %v958_v39 = vsel %vm358_vm0, %v796_v28, %v860_v37  ;;  %v976_v40 = vsel %vm961_vm2, %v959_v32, %v926_v38 }
 0x1aa   : > { %v975_v41 = vsel %vm961_vm2, %v958_v39, %v924_v25  ;;  %993 = vst.msk [vmem:[%s1760_s29 + $0x70] sm:$0xff] %vm978_vm3, %v976_v40 }
 0x1ab   : > { %992 = vst.msk [vmem:[%s1760_s29 + $0x68] sm:$0xff] %vm978_vm3, %v975_v41 }
 0x1ac   : > { %v928_v43 = vpop.permute.xlu0 %927 }
 0x1ad   : > { %v977_v44 = vsel %vm961_vm2, %v960_v42, %v928_v43 }
 0x1ae   : > { %994 = vst.msk [vmem:[%s1760_s29 + $0x78] sm:$0xff] %vm978_vm3, %v977_v44 }
 0x1af PF: > { %s16_s22 = sadd.s32 1, %s1329_s22   ;;  %s1847_s18 = smov %s1321_s20 }
 0x1b0   : > { %p13_p7 = scmp.ge.s32.totalorder %s16_s22, 6   ;;  %s1848_s19 = smov %s1325_s21 }
 0x1b1   : > { %s1849_s20 = smov %s1852_s23  ;;  %s1850_s21 = smov %s1856_s24 }
 0x1b2   :  { %15 = sbr.rel (!%p13_p7) target bundleno = 3 (0x3), region = 81 }

</bundles_post_ra>
